<compile_context>
chip_gen: v5e
topology: v5e:2x2
jax: 0.10.0
libtpu: 0.0.40
codegen_flags: <defaults>
</compile_context>

<pallas_src>
import jax
import jax.numpy as jnp
from jax.experimental import pallas as pl
from jax.experimental.pallas import tpu as pltpu

HIDDEN = 512


def mine_kernel(x_ref, y_ref, w1x_ref, w1y_ref, b1_ref, w2_ref, b2_ref, o_ref):
    # x_ref, y_ref : [TB, D]   (bf16)         w1x_ref, w1y_ref : [D, 512] (bf16)
    # b1_ref : [1, 512] f32    w2_ref : [1, 512] f32    b2_ref : [1, 1] f32
    # o_ref  : [TB, 1] f32
    # Layer 1 on the MXU, f32 accumulation.
    h = jnp.dot(x_ref[...], w1x_ref[...], preferred_element_type=jnp.float32)
    h = h + jnp.dot(y_ref[...], w1y_ref[...], preferred_element_type=jnp.float32)
    h = jnp.maximum(h + b1_ref[...], 0.0)  # bias + ReLU in f32 on the VPU
    # Layer 2: [512, 1] matvec as a VPU multiply + lane reduction (MXU stays
    # free for the real GEMM of the next grid step).
    out = jnp.sum(h * w2_ref[...], axis=-1, keepdims=True) + b2_ref[...]
    o_ref[...] = out.astype(o_ref.dtype)


def mine_forward(x, y, w1, b1, w2, b2, *, block_b=1024,
                 compute_dtype=jnp.bfloat16):
    """x, y: [B, D]; w1: [2D, 512]; b1: [512]; w2: [512, 1]; b2: [1].

    Returns [B, 1] float32, matching relu(cat(x,y) @ w1 + b1) @ w2 + b2.
    """
    B, D = x.shape
    assert w1.shape == (2 * D, HIDDEN)

    # One-time weight prep (outside the hot path): split fc1's weight so the
    # kernel never needs the concatenated input, and lay fc2 out as a row.
    w1x = w1[:D].astype(compute_dtype)          # [D, 512]
    w1y = w1[D:].astype(compute_dtype)          # [D, 512]
    b1r = b1.reshape(1, HIDDEN).astype(jnp.float32)
    w2r = w2.reshape(1, HIDDEN).astype(jnp.float32)
    b2r = b2.reshape(1, 1).astype(jnp.float32)

    xc = x.astype(compute_dtype)
    yc = y.astype(compute_dtype)

    # Batch tiling. Tiny batches run as a single grid step (no padding); large
    # batches use TB=block_b (multiple of 128) and pad the tail tile.
    if B <= block_b:
        tb = B
        grid_b = 1
        b_pad = B
    else:
        tb = block_b
        grid_b = pl.cdiv(B, tb)
        b_pad = grid_b * tb

    if b_pad != B:
        pad = b_pad - B
        xc = jnp.pad(xc, ((0, pad), (0, 0)))
        yc = jnp.pad(yc, ((0, pad), (0, 0)))

    out = pl.pallas_call(
        mine_kernel,
        out_shape=jax.ShapeDtypeStruct((b_pad, 1), jnp.float32),
        grid_spec=pltpu.PrefetchScalarGridSpec(
            num_scalar_prefetch=0,
            grid=(grid_b,),
            in_specs=[
                pl.BlockSpec((tb, D), lambda i: (i, 0)),        # x tile
                pl.BlockSpec((tb, D), lambda i: (i, 0)),        # y tile
                pl.BlockSpec((D, HIDDEN), lambda i: (0, 0)),    # w1_x (resident)
                pl.BlockSpec((D, HIDDEN), lambda i: (0, 0)),    # w1_y (resident)
                pl.BlockSpec((1, HIDDEN), lambda i: (0, 0)),    # b1   (resident)
                pl.BlockSpec((1, HIDDEN), lambda i: (0, 0)),    # w2 row (resident)
                pl.BlockSpec((1, 1), lambda i: (0, 0)),         # b2   (resident)
            ],
            out_specs=pl.BlockSpec((tb, 1), lambda i: (i, 0)),
        ),
        compiler_params=pltpu.CompilerParams(
            dimension_semantics=("parallel",),          # megacore split on v7x
            vmem_limit_bytes=32 * 1024 * 1024,          # plenty of headroom
        ),
    )(xc, yc, w1x, w1y, b1r, w2r, b2r)

    return out[:B]


def init_params(key, input_size):
    """Deterministic init mimicking nn.Linear shapes (uniform +-1/sqrt(fan_in)).

    Weights are stored as [in_features, out_features] (transposed vs. PyTorch).
    """
    k1, k2, k3, k4 = jax.random.split(key, 4)
    fan1 = 2 * input_size
    lim1 = 1.0 / (fan1 ** 0.5)
    w1 = jax.random.uniform(k1, (fan1, HIDDEN), jnp.float32, -lim1, lim1)
    b1 = jax.random.uniform(k2, (HIDDEN,), jnp.float32, -lim1, lim1)
    lim2 = 1.0 / (HIDDEN ** 0.5)
    w2 = jax.random.uniform(k3, (HIDDEN, 1), jnp.float32, -lim2, lim2)
    b2 = jax.random.uniform(k4, (1,), jnp.float32, -lim2, lim2)
    return w1, b1, w2, b2


if __name__ == "__main__":
    key = jax.random.PRNGKey(0)
    kx, ky, kp = jax.random.split(key, 3)

    B = 8
    INPUT_SIZE = 32
    x = jax.random.normal(kx, (B, INPUT_SIZE), jnp.float32)
    y = jax.random.normal(ky, (B, INPUT_SIZE), jnp.float32)
    w1, b1, w2, b2 = init_params(kp, INPUT_SIZE)

    out = mine_forward(x, y, w1, b1, w2, b2)
    out = jax.block_until_ready(out)
    assert out.shape == (B, 1)

    # Reference with matched bf16 quantization of the matmul inputs
    # (f32 accumulation), i.e. exactly what the kernel computes.
    xb = x.astype(jnp.bfloat16)
    yb = y.astype(jnp.bfloat16)
    w1b = w1.astype(jnp.bfloat16)
    combined_b = jnp.concatenate([xb, yb], axis=-1)
    h_ref = jnp.maximum(
        jnp.dot(combined_b, w1b, preferred_element_type=jnp.float32) + b1, 0.0)
    ref = jnp.sum(h_ref * w2.reshape(1, HIDDEN), axis=-1, keepdims=True) + b2
    assert jnp.allclose(out, ref, atol=1e-4, rtol=1e-4)

    # Loose sanity check against the pure-f32 PyTorch-equivalent forward
    # (tolerance relaxed because matmul inputs are bf16-quantized).
    combined_f = jnp.concatenate([x, y], axis=-1)
    ref_f32 = jnp.maximum(combined_f @ w1 + b1, 0.0) @ w2 + b2
    assert jnp.allclose(out, ref_f32, atol=5e-2, rtol=5e-2)

    print("KERNEL_OK")
</pallas_src>

<mosaic_0001>
module attributes {stable_mosaic.version = 11 : i64} {
  func.func @mine_kernel(%arg0: i32, %arg1: memref<8x32xbf16, #tpu.memory_space<vmem>>, %arg2: memref<8x32xbf16, #tpu.memory_space<vmem>>, %arg3: memref<32x512xbf16, #tpu.memory_space<vmem>>, %arg4: memref<32x512xbf16, #tpu.memory_space<vmem>>, %arg5: memref<1x512xf32, #tpu.memory_space<vmem>>, %arg6: memref<1x512xf32, #tpu.memory_space<vmem>>, %arg7: memref<1x1xf32, #tpu.memory_space<vmem>>, %arg8: memref<8x1xf32, #tpu.memory_space<vmem>>) attributes {dimension_semantics = [#tpu.dimension_semantics<parallel>], iteration_bounds = array<i64: 1>, scalar_prefetch = 0 : i64, scratch_operands = 0 : i64, tpu.core_type = #tpu.core_type<tc>, window_params = [{transform_indices = @transform_0, window_bounds = array<i64: 8, 32>}, {transform_indices = @transform_1, window_bounds = array<i64: 8, 32>}, {pipeline_mode = #tpu.pipeline_mode<synchronous>, transform_indices = @transform_2, window_bounds = array<i64: 32, 512>}, {pipeline_mode = #tpu.pipeline_mode<synchronous>, transform_indices = @transform_3, window_bounds = array<i64: 32, 512>}, {pipeline_mode = #tpu.pipeline_mode<synchronous>, transform_indices = @transform_4, window_bounds = array<i64: 1, 512>}, {pipeline_mode = #tpu.pipeline_mode<synchronous>, transform_indices = @transform_5, window_bounds = array<i64: 1, 512>}, {pipeline_mode = #tpu.pipeline_mode<synchronous>, transform_indices = @transform_6, window_bounds = array<i64: 1, 1>}, {transform_indices = @transform_7, window_bounds = array<i64: 8, 1>}]} {
    %c0 = arith.constant 0 : index
    %c0_0 = arith.constant 0 : index
    %0 = vector.load %arg1[%c0, %c0_0] : memref<8x32xbf16, #tpu.memory_space<vmem>>, vector<8x32xbf16>
    %c0_1 = arith.constant 0 : index
    %c0_2 = arith.constant 0 : index
    %1 = vector.load %arg3[%c0_1, %c0_2] : memref<32x512xbf16, #tpu.memory_space<vmem>>, vector<32x512xbf16>
    %cst = arith.constant dense<0.000000e+00> : vector<8x512xf32>
    %2 = tpu.matmul %0, %1, %cst {dimension_numbers = #tpu.dot_dimension_numbers<[1], [0], [0], [1], [0, 0, 1, 1], [], []>} : vector<8x32xbf16>, vector<32x512xbf16>, vector<8x512xf32> -> vector<8x512xf32>
    %c0_3 = arith.constant 0 : index
    %c0_4 = arith.constant 0 : index
    %3 = vector.load %arg2[%c0_3, %c0_4] : memref<8x32xbf16, #tpu.memory_space<vmem>>, vector<8x32xbf16>
    %c0_5 = arith.constant 0 : index
    %c0_6 = arith.constant 0 : index
    %4 = vector.load %arg4[%c0_5, %c0_6] : memref<32x512xbf16, #tpu.memory_space<vmem>>, vector<32x512xbf16>
    %cst_7 = arith.constant dense<0.000000e+00> : vector<8x512xf32>
    %5 = tpu.matmul %3, %4, %cst_7 {dimension_numbers = #tpu.dot_dimension_numbers<[1], [0], [0], [1], [0, 0, 1, 1], [], []>} : vector<8x32xbf16>, vector<32x512xbf16>, vector<8x512xf32> -> vector<8x512xf32>
    %6 = arith.addf %2, %5 : vector<8x512xf32>
    %c0_8 = arith.constant 0 : index
    %c0_9 = arith.constant 0 : index
    %7 = vector.load %arg5[%c0_8, %c0_9] : memref<1x512xf32, #tpu.memory_space<vmem>>, vector<1x512xf32>
    %8 = vector.broadcast %7 : vector<1x512xf32> to vector<8x512xf32>
    %9 = arith.addf %6, %8 : vector<8x512xf32>
    %cst_10 = arith.constant 0.000000e+00 : f32
    %10 = vector.broadcast %cst_10 : f32 to vector<8x512xf32>
    %11 = arith.maximumf %9, %10 : vector<8x512xf32>
    %c0_11 = arith.constant 0 : index
    %c0_12 = arith.constant 0 : index
    %12 = vector.load %arg6[%c0_11, %c0_12] : memref<1x512xf32, #tpu.memory_space<vmem>>, vector<1x512xf32>
    %13 = vector.broadcast %12 : vector<1x512xf32> to vector<8x512xf32>
    %14 = arith.mulf %11, %13 : vector<8x512xf32>
    %cst_13 = arith.constant dense<0.000000e+00> : vector<8xf32>
    %15 = vector.multi_reduction <add>, %14, %cst_13 [1] : vector<8x512xf32> to vector<8xf32>
    %16 = vector.shape_cast %15 : vector<8xf32> to vector<8x1xf32>
    %c0_14 = arith.constant 0 : index
    %c0_15 = arith.constant 0 : index
    %17 = vector.load %arg7[%c0_14, %c0_15] : memref<1x1xf32, #tpu.memory_space<vmem>>, vector<1x1xf32>
    %18 = vector.broadcast %17 : vector<1x1xf32> to vector<8x1xf32>
    %19 = arith.addf %16, %18 : vector<8x1xf32>
    %c0_16 = arith.constant 0 : index
    %c0_17 = arith.constant 0 : index
    %20 = vector.load %arg8[%c0_16, %c0_17] : memref<8x1xf32, #tpu.memory_space<vmem>>, vector<8x1xf32>
    tpu.vector_store %arg8[%c0_16, %c0_17], %19 {strides = array<i32>} : memref<8x1xf32, #tpu.memory_space<vmem>>, vector<8x1xf32>,
    return
  }
  func.func @transform_0(%arg0: i32) -> (i32, i32) {
    %c0_i32 = arith.constant 0 : i32
    %c0_i32_0 = arith.constant 0 : i32
    return %arg0, %c0_i32 : i32, i32
  }
  func.func @transform_1(%arg0: i32) -> (i32, i32) {
    %c0_i32 = arith.constant 0 : i32
    %c0_i32_0 = arith.constant 0 : i32
    return %arg0, %c0_i32 : i32, i32
  }
  func.func @transform_2(%arg0: i32) -> (i32, i32) {
    %c0_i32 = arith.constant 0 : i32
    %c0_i32_0 = arith.constant 0 : i32
    %c0_i32_1 = arith.constant 0 : i32
    return %c0_i32, %c0_i32_0 : i32, i32
  }
  func.func @transform_3(%arg0: i32) -> (i32, i32) {
    %c0_i32 = arith.constant 0 : i32
    %c0_i32_0 = arith.constant 0 : i32
    %c0_i32_1 = arith.constant 0 : i32
    return %c0_i32, %c0_i32_0 : i32, i32
  }
  func.func @transform_4(%arg0: i32) -> (i32, i32) {
    %c0_i32 = arith.constant 0 : i32
    %c0_i32_0 = arith.constant 0 : i32
    %c0_i32_1 = arith.constant 0 : i32
    return %c0_i32, %c0_i32_0 : i32, i32
  }
  func.func @transform_5(%arg0: i32) -> (i32, i32) {
    %c0_i32 = arith.constant 0 : i32
    %c0_i32_0 = arith.constant 0 : i32
    %c0_i32_1 = arith.constant 0 : i32
    return %c0_i32, %c0_i32_0 : i32, i32
  }
  func.func @transform_6(%arg0: i32) -> (i32, i32) {
    %c0_i32 = arith.constant 0 : i32
    %c0_i32_0 = arith.constant 0 : i32
    %c0_i32_1 = arith.constant 0 : i32
    return %c0_i32, %c0_i32_0 : i32, i32
  }
  func.func @transform_7(%arg0: i32) -> (i32, i32) {
    %c0_i32 = arith.constant 0 : i32
    %c0_i32_0 = arith.constant 0 : i32
    return %arg0, %c0_i32 : i32, i32
  }
}

</mosaic_0001>

<bundles_post_ra>
// kernel: tpu_custom_call.1
= control target key start
LH: loop header
LB: loop body
LE: loop exit
PB: predicated region body
PF: predicated region fallthrough
CT: control target
= control target key end

     0   :  { %s662_s0 = inlined_call_operand.hbm [shape: bf16[8,32], index: 0, kind: input, shape index: {}]   ;;  %s663_s1 = inlined_call_operand.hbm [shape: bf16[8,32], index: 1, kind: input, shape index: {}]   ;;  %s664_s2 = inlined_call_operand.hbm [shape: bf16[32,512], index: 2, kind: input, shape index: {}]   ;;  %s665_s3 = inlined_call_operand.hbm [shape: bf16[32,512], index: 3, kind: input, shape index: {}]   ;;  %s666_s4 = inlined_call_operand.vmem [shape: f32[1,512], index: 4, kind: input, shape index: {}]   ;;  %s667_s5 = inlined_call_operand.hbm [shape: f32[1,512], index: 5, kind: input, shape index: {}]   ;;  %s668_s6 = inlined_call_operand.<no memory space> [shape: f32[1,1], index: 6, kind: input, shape index: {}]   ;;  %s669_s7 = inlined_call_operand.vmem [shape: f32[8,1], index: 7, kind: output, shape index: {}]  }
   0x1   :  { %v12_v0 = vstv %s668_s6 }
   0x2   :  { %13 = vst [vmem:[#allocation2] sm:$0x1] %v12_v0 }
   0x3   :  { %14 = vsyncpa [#allocation4], 0 }
   0x4   :  { %15 = vsyncpa [#allocation6], 0  ;;  %s33_s28 = sshll.u32 %s663_s1, 4  ;;  %s34_s28 = int_to_ptr.hbm [resolvable:$true] %s33_s28 }
   0x5   :  { %16 = vsyncpa [#allocation9], 0  ;;  %s583_s29 = smov [#allocation5]   ;;  %s56_s10 = sshll.u32 %s665_s3, 4  ;;  %s57_s10 = int_to_ptr.hbm [resolvable:$true] %s56_s10 }
   0x6   :  { %s35_s30 = sshll.u32 %s583_s29, 4  ;;  %s584_s11 = smov [#allocation8]   ;;  %s36_s30 = int_to_ptr.vmem [resolvable:$true] %s35_s30 }
   0x7   :  { %38 = dma.hbm_to_vmem [thread:$0]  %s34_s28, 64, %s36_s30, [#allocation6]  }
   0x8   :  { %s58_s6 = sshll.u32 %s584_s11, 4  ;;  %s22_s14 = sshll.u32 %s662_s0, 4  ;;  %s59_s6 = int_to_ptr.vmem [resolvable:$true] %s58_s6  ;;  %s23_s14 = int_to_ptr.hbm [resolvable:$true] %s22_s14 }
   0x9   :  { %s585_s1 = smov 256   ;;  %s586_s15 = smov 16  }
   0xa   :  { %64 = dma.hbm_to_vmem [thread:$0]  %s57_s10, 1024, %s59_s6, [#allocation9], %s585_s1, %s585_s1, %s586_s15  }
   0xb   :  { %s43_s18 = sshll.u32 %s664_s2, 4  ;;  %s587_s19 = smov [#allocation3]   ;;  %s44_s18 = int_to_ptr.hbm [resolvable:$true] %s43_s18 }
   0xc   :  { %s24_s20 = sshll.u32 %s587_s19, 4  ;;  %s588_s3 = smov [#allocation7]   ;;  %s25_s20 = int_to_ptr.vmem [resolvable:$true] %s24_s20 }
   0xd   :  { %27 = dma.hbm_to_vmem [thread:$0]  %s23_s14, 64, %s25_s20, [#allocation4]  }
   0xe   :  { %s45_s21 = sshll.u32 %s588_s3, 4  ;;  %s72_s0 = sshll.u32 %s667_s5, 4  ;;  %s46_s21 = int_to_ptr.vmem [resolvable:$true] %s45_s21  ;;  %s73_s0 = int_to_ptr.hbm [resolvable:$true] %s72_s0 }
   0xf   :  { %51 = dma.hbm_to_vmem [thread:$0]  %s44_s18, 1024, %s46_s21, [#allocation6], %s585_s1, %s585_s1, %s586_s15  }
  0x10   :  { %s589_s24 = smov [#allocation10]  }
  0x11   :  { %s74_s25 = sshll.u32 %s589_s24, 4  ;;  %s75_s25 = int_to_ptr.vmem [resolvable:$true] %s74_s25 }
  0x12   :  { %77 = dma.hbm_to_vmem [thread:$0]  %s73_s0, 64, %s75_s25, [#allocation9]  }
  0x13   :  { %577 = dma.done.wait [#allocation4], 64  }
  0x14   :  { %578 = vsyncadd [#allocation4], 4294967232 }
  0x15   :  { %579 = dma.done.wait [#allocation6], 1088  }
  0x16   :  { %580 = vsyncadd [#allocation6], 4294966208 }
  0x17   :  { %581 = dma.done.wait [#allocation9], 1088  }
  0x18   :  { %582 = vsyncadd [#allocation9], 4294966208  ;;  %vm159_vm0 = vcmask 261120   ;;  %v379_v1 = vld [vmem:[#allocation8 + $0x20] sm:$0xf]  ;;  %vm352_vm1 = vcmask 7168  }
  0x19   :  { %v447_v2 = vld [vmem:[#allocation8 + $0x2c] sm:$0xf0]  ;;  %v445_v3 = vld [vmem:[#allocation8 + $0x24] sm:$0xf]  ;;  %v381_v5 = vld [vmem:[#allocation8 + $0x30] sm:$0xf0] }
  0x1a   :  { %v380_v4 = vor.u32 %v447_v2, %v379_v1  ;;  %v387_v6 = vld [vmem:[#allocation8 + $0x28] sm:$0xf]  ;;  %v448_v7 = vld [vmem:[#allocation8 + $0x34] sm:$0xf0]  ;;  %v384_v8 = vor.u32 %v445_v3, %v381_v5  ;;  %v446_v10 = vld [vmem:[#allocation8 + $0x2c] sm:$0xf] }
  0x1b   :  { %v388_v9 = vor.u32 %v448_v7, %v387_v6  ;;  %v389_v11 = vld [vmem:[#allocation8 + $0x38] sm:$0xf0]  ;;  %v363_v12 = vld [vmem:[#allocation8] sm:$0xf]  ;;  %v443_v14 = vld [vmem:[#allocation8 + $0xc] sm:$0xf0] }
  0x1c   :  { %169 = vmatpush.bf16.msra.mxu0 %v380_v4  ;;  %v392_v13 = vor.u32 %v446_v10, %v389_v11  ;;  %v441_v15 = vld [vmem:[#allocation8 + $0x4] sm:$0xf]  ;;  %v365_v16 = vld [vmem:[#allocation8 + $0x10] sm:$0xf0]  ;;  %182 = vmatpush.bf16.msra.mxu1 %v384_v8  ;;  %v364_v17 = vor.u32 %v443_v14, %v363_v12  ;;  %v371_v19 = vld [vmem:[#allocation8 + $0x8] sm:$0xf] }
  0x1d   :  { %195 = vmatpush.bf16.msra.mxu2 %v388_v9  ;;  %v368_v18 = vor.u32 %v441_v15, %v365_v16  ;;  %v444_v20 = vld [vmem:[#allocation8 + $0x14] sm:$0xf0]  ;;  %v442_v21 = vld [vmem:[#allocation8 + $0xc] sm:$0xf]  ;;  %v373_v23 = vld [vmem:[#allocation8 + $0x18] sm:$0xf0] }
  0x1e   :  { %208 = vmatpush.bf16.msra.mxu3 %v392_v13  ;;  %v372_v22 = vor.u32 %v444_v20, %v371_v19  ;;  %v110_v24 = vld [vmem:[#allocation5] sm:$0xf]  ;;  %v423_v25 = vld [vmem:[#allocation7 + $0x28] sm:$0xf]  ;;  %v376_v26 = vor.u32 %v442_v21, %v373_v23  ;;  %v440_v27 = vld [vmem:[#allocation7 + $0x34] sm:$0xf0] }
  0x1f   :  { %v438_v28 = vld [vmem:[#allocation7 + $0x2c] sm:$0xf]  ;;  %v425_v29 = vld [vmem:[#allocation7 + $0x38] sm:$0xf0]  ;;  %v424_v30 = vor.u32 %v440_v27, %v423_v25  ;;  %v415_v32 = vld [vmem:[#allocation7 + $0x20] sm:$0xf] }
  0x20   :  { %170 = vmatpush.bf16.msra.mxu0 %v364_v17  ;;  %v428_v31 = vor.u32 %v438_v28, %v425_v29  ;;  %v439_v33 = vld [vmem:[#allocation7 + $0x2c] sm:$0xf0]  ;;  %v437_v34 = vld [vmem:[#allocation7 + $0x24] sm:$0xf]  ;;  %183 = vmatpush.bf16.msra.mxu1 %v368_v18  ;;  %v417_v36 = vld [vmem:[#allocation7 + $0x30] sm:$0xf0] }
  0x21   :  { %196 = vmatpush.bf16.msra.mxu2 %v372_v22  ;;  %v416_v35 = vor.u32 %v439_v33, %v415_v32  ;;  %v407_v37 = vld [vmem:[#allocation7 + $0x8] sm:$0xf]  ;;  %v436_v38 = vld [vmem:[#allocation7 + $0x14] sm:$0xf0]  ;;  %v420_v39 = vor.u32 %v437_v34, %v417_v36  ;;  %v434_v41 = vld [vmem:[#allocation7 + $0xc] sm:$0xf] }
  0x22   :  { %209 = vmatpush.bf16.msra.mxu3 %v376_v26  ;;  %v408_v40 = vor.u32 %v436_v38, %v407_v37  ;;  %v409_v42 = vld [vmem:[#allocation7 + $0x18] sm:$0xf0]  ;;  %v399_v43 = vld [vmem:[#allocation7] sm:$0xf]  ;;  %v435_v45 = vld [vmem:[#allocation7 + $0xc] sm:$0xf0] }
  0x23   :  { %393 = vmatmul.msk.bf16.vlgmr.msra.gmra.mxu0 %vm159_vm0, %v110_v24  ;;  %v412_v44 = vor.u32 %v434_v41, %v409_v42  ;;  %v433_v46 = vld [vmem:[#allocation7 + $0x4] sm:$0xf]  ;;  %v401_v47 = vld [vmem:[#allocation7 + $0x10] sm:$0xf0]  ;;  %394 = vmatmul.msk.bf16.vlgmr.msra.gmra.mxu1 %vm159_vm0, %v110_v24  ;;  %v400_v48 = vor.u32 %v435_v45, %v399_v43  ;;  %v101_v50 = vld [vmem:[#allocation3] sm:$0xf] }
  0x24   :  { %395 = vmatmul.msk.bf16.vlgmr.msra.gmra.mxu2 %vm159_vm0, %v110_v24  ;;  %264 = vmatpush.bf16.msrb.mxu0 %v416_v35  ;;  %v404_v49 = vor.u32 %v433_v46, %v401_v47  ;;  %v310_v57 = vld [vmem:[%s666_s4] sm:$0xf]  ;;  %v328_v1 = vld [vmem:[#allocation10] sm:$0xf] }
  0x25   :  { %290 = vmatpush.bf16.msrb.mxu2 %v424_v30  ;;  %396 = vmatmul.msk.bf16.vlgmr.msra.gmra.mxu3 %vm159_vm0, %v110_v24  ;;  %v312_v59 = vperm.slane %v310_v57, 0  ;;  %v313_v62 = vperm.slane %v310_v57, 1  ;;  %v330_v5 = vperm.slane %v328_v1, 0  ;;  %v331_v8 = vperm.slane %v328_v1, 1  ;;  %v456_v32 = vld [vmem:[#allocation2] ss:$0 sm:$0xff] }
  0x26   :  { %303 = vmatpush.bf16.msrb.mxu3 %v428_v31  ;;  %277 = vmatpush.bf16.msrb.mxu1 %v420_v39  ;;  %v314_v9 = vperm.slane %v310_v57, 2  ;;  %v315_v11 = vperm.slane %v310_v57, 3  ;;  %v332_v20 = vperm.slane %v328_v1, 2  ;;  %v333_v23 = vperm.slane %v328_v1, 3 }
  0x28   :  { %265 = vmatpush.bf16.msrb.mxu0 %v400_v48 }
  0x29   :  { %291 = vmatpush.bf16.msrb.mxu2 %v408_v40 }
  0x2a   :  { %304 = vmatpush.bf16.msrb.mxu3 %v412_v44  ;;  %278 = vmatpush.bf16.msrb.mxu1 %v404_v49 }
  0x33   :  { %429 = vmatmul.msk.bf16.vlgmr.msrb.gmra.mxu0 %vm159_vm0, %v101_v50  ;;  %430 = vmatmul.msk.bf16.vlgmr.msrb.gmra.mxu1 %vm159_vm0, %v101_v50 }
  0x34   :  { %431 = vmatmul.msk.bf16.vlgmr.msrb.gmra.mxu2 %vm159_vm0, %v101_v50 }
  0x35   :  { %432 = vmatmul.msk.bf16.vlgmr.msrb.gmra.mxu3 %vm159_vm0, %v101_v50 }
  0xa0   :  { %v172_v51 = vpop.f32.mrf.mxu0  ;;  %v185_v52 = vpop.f32.mrf.mxu1 }
  0xa7   :  { %v198_v53 = vpop.f32.mrf.mxu2 }
  0xa8   :  { %v211_v54 = vpop.f32.mrf.mxu3  ;;  %v174_v55 = vpop.f32.mrf.mxu0 }
  0xa9   :  { %v187_v56 = vpop.f32.mrf.mxu1 }
  0xaf   :  { %v200_v58 = vpop.f32.mrf.mxu2 }
  0xb0   :  { %v213_v60 = vpop.f32.mrf.mxu3  ;;  %v267_v61 = vpop.f32.mrf.mxu0 }
  0xb1   :  { %v268_v63 = vadd.f32 %v267_v61, %v172_v51  ;;  %v280_v0 = vpop.f32.mrf.mxu1 }
  0xb2   :  { %v281_v2 = vadd.f32 %v280_v0, %v185_v52 }
  0xb3   :  { %v320_v3 = vadd.f32 %v312_v59, %v268_v63 }
  0xb4   :  { %v321_v4 = vadd.f32 %v313_v62, %v281_v2 }
  0xb5   :  { %v324_v6 = vmax.f32 %v320_v3, 0.0 }
  0xb6   :  { %v325_v7 = vmax.f32 %v321_v4, 0.0 }
  0xb7   :  { %v293_v10 = vpop.f32.mrf.mxu2  ;;  %v338_v17 = vmul.f32 %v330_v5, %v324_v6 }
  0xb8   :  { %v294_v12 = vadd.f32 %v293_v10, %v198_v53  ;;  %v306_v13 = vpop.f32.mrf.mxu3  ;;  %v269_v14 = vpop.f32.mrf.mxu0  ;;  %v339_v18 = vmul.f32 %v331_v8, %v325_v7 }
  0xb9   :  { %v307_v15 = vadd.f32 %v306_v13, %v211_v54  ;;  %v282_v16 = vpop.f32.mrf.mxu1 }
  0xba   :  { %v322_v19 = vadd.f32 %v314_v9, %v294_v12  ;;  %v342_v26 = vadd.f32 %v339_v18, %v338_v17 }
  0xbb   :  { %v323_v21 = vadd.f32 %v315_v11, %v307_v15 }
  0xbc   :  { %v326_v22 = vmax.f32 %v322_v19, 0.0 }
  0xbd   :  { %v327_v24 = vmax.f32 %v323_v21, 0.0 }
  0xbe   :  { %v340_v25 = vmul.f32 %v332_v20, %v326_v22 }
  0xbf   :  { %v295_v27 = vpop.f32.mrf.mxu2  ;;  %v341_v29 = vmul.f32 %v333_v23, %v327_v24 }
  0xc0   :  { %v308_v28 = vpop.f32.mrf.mxu3  ;;  %v343_v30 = vadd.f32 %v342_v26, %v340_v25 }
  0xc2   :  { %v344_v31 = vadd.f32 %v343_v30, %v341_v29 }
  0xc4   :  { %345 = vadd.xlane.f32.xlu0 %v344_v31 }
 0x137   :  { %v346_v33 = vpop.xlane.xlu0 %345 }
 0x138   :  { %v351_v34 = vadd.f32 %v456_v32, %v346_v33 }
 0x13a   :  { %353 = vst.msk [vmem:[%s669_s7] sm:$0xff] %vm352_vm1, %v351_v34 }
 0x13b   :  { %358 = vsyncpa [#allocation4], 1 }
 0x13c   :  { %359 = vsyncpa [#allocation6], 1 }
 0x13d   :  { %360 = vsyncpa [#allocation9], 1 }

</bundles_post_ra>
